<compile_context>
chip_gen: v6e
topology: v6e:2x2x1
jax: 0.10.0
libtpu: 0.0.40
codegen_flags: <defaults>
</compile_context>

<pallas_src>
import jax
import jax.numpy as jnp
from jax import lax
from jax.experimental import pallas as pl
from jax.experimental.pallas import tpu as pltpu

BN_EPS = 1e-5
LANE = 128


def _mlp_kernel(x_ref, w1_ref, w2_ref, w3_ref, bn_ref, b3_ref, o_ref):
    x = x_ref[...]                      # f32, MXU consumes directly
    inv_b = 1.0 / x.shape[0]            # static at trace time

    bn = bn_ref[...]                    # (4, H_pad): [gamma1, beta1, gamma2, beta2]

    def bn_relu(h, g, beta):
        # Single-pass batch stats (biased variance, PyTorch training-mode BatchNorm1d).
        s = jnp.sum(h, axis=0, keepdims=True)            # XLU reduce (slack unit)
        sq = jnp.sum(h * h, axis=0, keepdims=True)
        mean = s * inv_b
        var = jnp.maximum(sq * inv_b - mean * mean, 0.0)
        scale = lax.rsqrt(var + BN_EPS) * g               # (1, H) -> EUP rsqrt
        offset = beta - mean * scale                      # (1, H)
        return jnp.maximum(h * scale + offset, 0.0)       # fused BN + ReLU

    # ---- Linear 1 (bias cancelled by BN) + BN + ReLU ----
    h = jnp.dot(x, w1_ref[...], preferred_element_type=jnp.float32)
    h = bn_relu(h, bn[0:1, :], bn[1:2, :])

    # ---- Linear 2 (bias cancelled by BN) + BN + ReLU ----
    h = jnp.dot(h, w2_ref[...], preferred_element_type=jnp.float32)
    h = bn_relu(h, bn[2:3, :], bn[3:4, :])

    # ---- Linear 3 (bias kept) ----
    out = jnp.dot(h, w3_ref[...], preferred_element_type=jnp.float32) + b3_ref[...]
    o_ref[...] = out.astype(o_ref.dtype)


def _pad_axis(a, axis, target):
    pad = target - a.shape[axis]
    if pad <= 0:
        return a
    widths = [(0, 0)] * a.ndim
    widths[axis] = (0, pad)
    return jnp.pad(a, widths)


def prepare_params(params):
    """One-time pack/pad of the PyTorch-shaped params for the fused kernel.

    - hidden and output dims are zero-padded to multiples of 128 (lane-dense MXU / stores);
      padded gamma/beta are 0 so padded features stay exactly 0 through BN+ReLU.
    - gamma1/beta1/gamma2/beta2 are packed into a single (4, H_pad) operand.
    - b1/b2 are intentionally not forwarded (cancelled by training-mode BN).
    """
    hidden = params["w1"].shape[1]
    out_dim = params["w3"].shape[1]
    hid_p = pl.cdiv(hidden, LANE) * LANE
    out_p = pl.cdiv(out_dim, LANE) * LANE

    w1 = _pad_axis(params["w1"], 1, hid_p)
    w2 = _pad_axis(_pad_axis(params["w2"], 0, hid_p), 1, hid_p)
    w3 = _pad_axis(_pad_axis(params["w3"], 0, hid_p), 1, out_p)
    b3 = _pad_axis(params["b3"], 1, out_p)
    bn = jnp.concatenate(
        [
            _pad_axis(params["g1"], 1, hid_p),
            _pad_axis(params["beta1"], 1, hid_p),
            _pad_axis(params["g2"], 1, hid_p),
            _pad_axis(params["beta2"], 1, hid_p),
        ],
        axis=0,
    )  # (4, hid_p)

    return dict(w1=w1, w2=w2, w3=w3, b3=b3, bn=bn, out_dim=out_dim)


def conditional_net_forward(x, packed):
    """x: [B, input_dim] float32.  packed: output of prepare_params()."""
    B = x.shape[0]
    out_pad = packed["w3"].shape[1]
    vspec = pl.BlockSpec(memory_space=pltpu.MemorySpace.VMEM)

    out_full = pl.pallas_call(
        _mlp_kernel,
        out_shape=jax.ShapeDtypeStruct((B, out_pad), jnp.float32),
        in_specs=[vspec] * 6,
        out_specs=vspec,
    )(x, packed["w1"], packed["w2"], packed["w3"], packed["bn"], packed["b3"])

    out_dim = packed["out_dim"]
    if out_dim == out_pad:
        return out_full
    return out_full[:, :out_dim]


def init_params(key, input_dim, output_dim, hidden_dim):
    """Deterministic synthetic parameters matching the PyTorch module's shapes.

    PyTorch Linear stores weight as (out, in); we store the transposed (in, out)
    so the kernel does x @ W.  Biases / BN affine params are stored as (1, F).
    """
    k1, k2, k3, k4, k5, k6 = jax.random.split(key, 6)

    def linear(kw, kb, fan_in, fan_out):
        bound = 1.0 / jnp.sqrt(fan_in)
        w = jax.random.uniform(kw, (fan_in, fan_out), jnp.float32, -bound, bound)
        b = jax.random.uniform(kb, (1, fan_out), jnp.float32, -bound, bound)
        return w, b

    w1, b1 = linear(k1, k2, input_dim, hidden_dim)
    w2, b2 = linear(k3, k4, hidden_dim, hidden_dim)
    w3, b3 = linear(k5, k6, hidden_dim, output_dim)

    # BatchNorm1d affine params: gamma=1, beta=0 (PyTorch default init).
    g1 = jnp.ones((1, hidden_dim), jnp.float32)
    beta1 = jnp.zeros((1, hidden_dim), jnp.float32)
    g2 = jnp.ones((1, hidden_dim), jnp.float32)
    beta2 = jnp.zeros((1, hidden_dim), jnp.float32)

    return dict(w1=w1, b1=b1, g1=g1, beta1=beta1,
                w2=w2, b2=b2, g2=g2, beta2=beta2,
                w3=w3, b3=b3)


def _reference_forward(x, p):
    """Plain-JAX reference with the literal PyTorch math (biases included)."""
    def bn(h, g, be):
        m = jnp.mean(h, axis=0, keepdims=True)
        v = jnp.mean((h - m) ** 2, axis=0, keepdims=True)
        return (h - m) / jnp.sqrt(v + BN_EPS) * g + be

    h = x @ p["w1"] + p["b1"]
    h = jnp.maximum(bn(h, p["g1"], p["beta1"]), 0.0)
    h = h @ p["w2"] + p["b2"]
    h = jnp.maximum(bn(h, p["g2"], p["beta2"]), 0.0)
    return h @ p["w3"] + p["b3"]


# TODO(synk): only training-mode BatchNorm (batch statistics) is implemented; running-stat
# tracking / eval mode is training-loop state, not part of this forward pass.

if __name__ == "__main__":
    key = jax.random.PRNGKey(0)
    k_x, k_p = jax.random.split(key)

    batch, input_dim, hidden_dim, output_dim = 8, 16, 32, 4

    x = jax.random.normal(k_x, (batch, input_dim), jnp.float32)
    params = init_params(k_p, input_dim, output_dim, hidden_dim)
    packed = prepare_params(params)

    out = conditional_net_forward(x, packed)
    out = jax.block_until_ready(out)

    ref = _reference_forward(x, params)
    assert out.shape == (batch, output_dim)
    assert jnp.allclose(out, ref, atol=1e-4, rtol=1e-4), "mismatch vs reference"

    print("KERNEL_OK")
</pallas_src>

<mosaic_0001>
module attributes {stable_mosaic.version = 11 : i64} {
  func.func @_mlp_kernel(%arg0: memref<8x16xf32, #tpu.memory_space<vmem>>, %arg1: memref<16x128xf32, #tpu.memory_space<vmem>>, %arg2: memref<128x128xf32, #tpu.memory_space<vmem>>, %arg3: memref<128x128xf32, #tpu.memory_space<vmem>>, %arg4: memref<4x128xf32, #tpu.memory_space<vmem>>, %arg5: memref<1x128xf32, #tpu.memory_space<vmem>>, %arg6: memref<8x128xf32, #tpu.memory_space<vmem>>) attributes {dimension_semantics = [], scalar_prefetch = 0 : i64, scratch_operands = 0 : i64, tpu.core_type = #tpu.core_type<tc>} {
    %c0 = arith.constant 0 : index
    %c0_0 = arith.constant 0 : index
    %0 = vector.load %arg0[%c0, %c0_0] : memref<8x16xf32, #tpu.memory_space<vmem>>, vector<8x16xf32>
    %c0_1 = arith.constant 0 : index
    %c0_2 = arith.constant 0 : index
    %1 = vector.load %arg4[%c0_1, %c0_2] : memref<4x128xf32, #tpu.memory_space<vmem>>, vector<4x128xf32>
    %c0_3 = arith.constant 0 : index
    %c0_4 = arith.constant 0 : index
    %2 = vector.load %arg1[%c0_3, %c0_4] : memref<16x128xf32, #tpu.memory_space<vmem>>, vector<16x128xf32>
    %cst = arith.constant dense<0.000000e+00> : vector<8x128xf32>
    %3 = tpu.matmul %0, %2, %cst {dimension_numbers = #tpu.dot_dimension_numbers<[1], [0], [0], [1], [0, 0, 1, 1], [], []>} : vector<8x16xf32>, vector<16x128xf32>, vector<8x128xf32> -> vector<8x128xf32>
    %4 = vector.extract_strided_slice %1 {offsets = [0, 0], sizes = [1, 128], strides = [1, 1]} : vector<4x128xf32> to vector<1x128xf32>
    %5 = vector.extract_strided_slice %1 {offsets = [1, 0], sizes = [1, 128], strides = [1, 1]} : vector<4x128xf32> to vector<1x128xf32>
    %cst_5 = arith.constant dense<0.000000e+00> : vector<128xf32>
    %6 = vector.multi_reduction <add>, %3, %cst_5 [0] : vector<8x128xf32> to vector<128xf32>
    %7 = vector.shape_cast %6 : vector<128xf32> to vector<1x128xf32>
    %8 = arith.mulf %3, %3 : vector<8x128xf32>
    %cst_6 = arith.constant dense<0.000000e+00> : vector<128xf32>
    %9 = vector.multi_reduction <add>, %8, %cst_6 [0] : vector<8x128xf32> to vector<128xf32>
    %10 = vector.shape_cast %9 : vector<128xf32> to vector<1x128xf32>
    %cst_7 = arith.constant 1.250000e-01 : f32
    %11 = vector.broadcast %cst_7 : f32 to vector<1x128xf32>
    %12 = arith.mulf %7, %11 : vector<1x128xf32>
    %cst_8 = arith.constant 1.250000e-01 : f32
    %13 = vector.broadcast %cst_8 : f32 to vector<1x128xf32>
    %14 = arith.mulf %10, %13 : vector<1x128xf32>
    %15 = arith.mulf %12, %12 : vector<1x128xf32>
    %16 = arith.subf %14, %15 : vector<1x128xf32>
    %cst_9 = arith.constant 0.000000e+00 : f32
    %17 = vector.broadcast %cst_9 : f32 to vector<1x128xf32>
    %18 = arith.maximumf %16, %17 : vector<1x128xf32>
    %cst_10 = arith.constant 9.99999974E-6 : f32
    %19 = vector.broadcast %cst_10 : f32 to vector<1x128xf32>
    %20 = arith.addf %18, %19 : vector<1x128xf32>
    %21 = math.rsqrt %20 : vector<1x128xf32>
    %22 = arith.mulf %21, %4 : vector<1x128xf32>
    %23 = arith.mulf %12, %22 : vector<1x128xf32>
    %24 = arith.subf %5, %23 : vector<1x128xf32>
    %25 = vector.broadcast %22 : vector<1x128xf32> to vector<8x128xf32>
    %26 = arith.mulf %3, %25 : vector<8x128xf32>
    %27 = vector.broadcast %24 : vector<1x128xf32> to vector<8x128xf32>
    %28 = arith.addf %26, %27 : vector<8x128xf32>
    %cst_11 = arith.constant 0.000000e+00 : f32
    %29 = vector.broadcast %cst_11 : f32 to vector<8x128xf32>
    %30 = arith.maximumf %28, %29 : vector<8x128xf32>
    %c0_12 = arith.constant 0 : index
    %c0_13 = arith.constant 0 : index
    %31 = vector.load %arg2[%c0_12, %c0_13] : memref<128x128xf32, #tpu.memory_space<vmem>>, vector<128x128xf32>
    %cst_14 = arith.constant dense<0.000000e+00> : vector<8x128xf32>
    %32 = tpu.matmul %30, %31, %cst_14 {dimension_numbers = #tpu.dot_dimension_numbers<[1], [0], [0], [1], [0, 0, 1, 1], [], []>} : vector<8x128xf32>, vector<128x128xf32>, vector<8x128xf32> -> vector<8x128xf32>
    %33 = vector.extract_strided_slice %1 {offsets = [2, 0], sizes = [1, 128], strides = [1, 1]} : vector<4x128xf32> to vector<1x128xf32>
    %34 = vector.extract_strided_slice %1 {offsets = [3, 0], sizes = [1, 128], strides = [1, 1]} : vector<4x128xf32> to vector<1x128xf32>
    %cst_15 = arith.constant dense<0.000000e+00> : vector<128xf32>
    %35 = vector.multi_reduction <add>, %32, %cst_15 [0] : vector<8x128xf32> to vector<128xf32>
    %36 = vector.shape_cast %35 : vector<128xf32> to vector<1x128xf32>
    %37 = arith.mulf %32, %32 : vector<8x128xf32>
    %cst_16 = arith.constant dense<0.000000e+00> : vector<128xf32>
    %38 = vector.multi_reduction <add>, %37, %cst_16 [0] : vector<8x128xf32> to vector<128xf32>
    %39 = vector.shape_cast %38 : vector<128xf32> to vector<1x128xf32>
    %cst_17 = arith.constant 1.250000e-01 : f32
    %40 = vector.broadcast %cst_17 : f32 to vector<1x128xf32>
    %41 = arith.mulf %36, %40 : vector<1x128xf32>
    %cst_18 = arith.constant 1.250000e-01 : f32
    %42 = vector.broadcast %cst_18 : f32 to vector<1x128xf32>
    %43 = arith.mulf %39, %42 : vector<1x128xf32>
    %44 = arith.mulf %41, %41 : vector<1x128xf32>
    %45 = arith.subf %43, %44 : vector<1x128xf32>
    %cst_19 = arith.constant 0.000000e+00 : f32
    %46 = vector.broadcast %cst_19 : f32 to vector<1x128xf32>
    %47 = arith.maximumf %45, %46 : vector<1x128xf32>
    %cst_20 = arith.constant 9.99999974E-6 : f32
    %48 = vector.broadcast %cst_20 : f32 to vector<1x128xf32>
    %49 = arith.addf %47, %48 : vector<1x128xf32>
    %50 = math.rsqrt %49 : vector<1x128xf32>
    %51 = arith.mulf %50, %33 : vector<1x128xf32>
    %52 = arith.mulf %41, %51 : vector<1x128xf32>
    %53 = arith.subf %34, %52 : vector<1x128xf32>
    %54 = vector.broadcast %51 : vector<1x128xf32> to vector<8x128xf32>
    %55 = arith.mulf %32, %54 : vector<8x128xf32>
    %56 = vector.broadcast %53 : vector<1x128xf32> to vector<8x128xf32>
    %57 = arith.addf %55, %56 : vector<8x128xf32>
    %cst_21 = arith.constant 0.000000e+00 : f32
    %58 = vector.broadcast %cst_21 : f32 to vector<8x128xf32>
    %59 = arith.maximumf %57, %58 : vector<8x128xf32>
    %c0_22 = arith.constant 0 : index
    %c0_23 = arith.constant 0 : index
    %60 = vector.load %arg3[%c0_22, %c0_23] : memref<128x128xf32, #tpu.memory_space<vmem>>, vector<128x128xf32>
    %cst_24 = arith.constant dense<0.000000e+00> : vector<8x128xf32>
    %61 = tpu.matmul %59, %60, %cst_24 {dimension_numbers = #tpu.dot_dimension_numbers<[1], [0], [0], [1], [0, 0, 1, 1], [], []>} : vector<8x128xf32>, vector<128x128xf32>, vector<8x128xf32> -> vector<8x128xf32>
    %c0_25 = arith.constant 0 : index
    %c0_26 = arith.constant 0 : index
    %62 = vector.load %arg5[%c0_25, %c0_26] : memref<1x128xf32, #tpu.memory_space<vmem>>, vector<1x128xf32>
    %63 = vector.broadcast %62 : vector<1x128xf32> to vector<8x128xf32>
    %64 = arith.addf %61, %63 : vector<8x128xf32>
    %c0_27 = arith.constant 0 : index
    %c0_28 = arith.constant 0 : index
    %65 = vector.load %arg6[%c0_27, %c0_28] : memref<8x128xf32, #tpu.memory_space<vmem>>, vector<8x128xf32>
    tpu.vector_store %arg6[%c0_27, %c0_28], %64 {strides = array<i32>} : memref<8x128xf32, #tpu.memory_space<vmem>>, vector<8x128xf32>,
    return
  }
}

</mosaic_0001>

<bundles_post_ra>
// kernel: tpu_custom_call.1
= control target key start
LH: loop header
LB: loop body
LE: loop exit
PB: predicated region body
PF: predicated region fallthrough
CT: control target
= control target key end

     0   :  { %11 = vsyncpa [#allocation3], 0  ;;  %s786_s0 = inlined_call_operand.hbm [shape: f32[8,16], index: 0, kind: input, shape index: {}]   ;;  %s787_s1 = inlined_call_operand.hbm [shape: f32[16,128], index: 1, kind: input, shape index: {}]   ;;  %s788_s2 = inlined_call_operand.hbm [shape: f32[128,128], index: 2, kind: input, shape index: {}]   ;;  %s789_s3 = inlined_call_operand.hbm [shape: f32[128,128], index: 3, kind: input, shape index: {}]   ;;  %s790_s4 = inlined_call_operand.vmem [shape: f32[4,128], index: 4, kind: input, shape index: {}]   ;;  %s791_s5 = inlined_call_operand.vmem [shape: f32[1,128], index: 5, kind: input, shape index: {}]   ;;  %s792_s6 = inlined_call_operand.hbm [shape: f32[8,128], index: 6, kind: output, shape index: {}]  }
   0x1   :  { %12 = vsyncpa [#allocation6], 0 }
   0x2   :  { %13 = vsyncpa [#allocation9], 0 }
   0x3   :  { %14 = vsyncpa [#allocation4], 0  ;;  %s663_s21 = smov [#allocation5]  }
   0x4   :  { %s30_s22 = sshll.u32 %s663_s21, 4  ;;  %s31_s22 = int_to_ptr.vmem [resolvable:$true] %s30_s22 }
   0x5   :  { %s563_s23 = scalar_lea.vmem %s31_s22, 256  ;;  %p568_p1 = scmp.lt.s32.totalorder %s31_s22, %s31_s22 }
   0x6   :  { %p564_p0 = scmp.ne.s32.totalorder %s31_s22, %s563_s23  ;;  %p569_p2 = scmp.lt.s32.totalorder %s563_s23, %s563_s23 }
   0x8   :  { %p570_p3 = por %p569_p2, %p568_p1 }
   0xa   :  { %p571_p4 = pnand %p570_p3, %p564_p0 }
   0xc   :  { %574 = shalt.err (!%p571_p4)
}
   0xd   :  { %s664_s24 = smov 128   ;;  %s665_s25 = smov 8  }
   0xe   :  { %36 = dma.hbm_to_vmem [thread:$0]  %s787_s1, 256, %s31_s22, [#allocation6], %s664_s24, %s664_s24, %s665_s25  }
   0xf   :  { %s666_s28 = smov [#allocation2]   ;;  %s667_s30 = smov [#allocation7]  }
  0x10   :  { %s21_s29 = sshll.u32 %s666_s28, 4  ;;  %s42_s7 = sshll.u32 %s667_s30, 4  ;;  %s22_s29 = int_to_ptr.vmem [resolvable:$true] %s21_s29  ;;  %s43_s7 = int_to_ptr.vmem [resolvable:$true] %s42_s7 }
  0x11   :  { %s583_s8 = scalar_lea.vmem %s22_s29, 128  ;;  %p588_p6 = scmp.lt.s32.totalorder %s22_s29, %s22_s29 }
  0x12   :  { %p584_p5 = scmp.ne.s32.totalorder %s22_s29, %s583_s8  ;;  %p589_p7 = scmp.lt.s32.totalorder %s583_s8, %s583_s8 }
  0x14   :  { %p590_p8 = por %p589_p7, %p588_p6 }
  0x16   :  { %p591_p9 = pnand %p590_p8, %p584_p5 }
  0x18   :  { %594 = shalt.err (!%p591_p9)
}
  0x19   :  { %24 = dma.hbm_to_vmem [thread:$0]  %s786_s0, 128, %s22_s29, [#allocation3]  }
  0x1a   :  { %s603_s11 = scalar_lea.vmem %s43_s7, 2048  ;;  %p608_p11 = scmp.lt.s32.totalorder %s43_s7, %s43_s7 }
  0x1b   :  { %p604_p10 = scmp.ne.s32.totalorder %s43_s7, %s603_s11  ;;  %p609_p12 = scmp.lt.s32.totalorder %s603_s11, %s603_s11 }
  0x1d   :  { %p610_p13 = por %p609_p12, %p608_p11 }
  0x1f   :  { %p611_p0 = pnand %p610_p13, %p604_p10 }
  0x21   :  { %614 = shalt.err (!%p611_p0)
}
  0x22   :  { %48 = dma.hbm_to_vmem [thread:$0]  %s788_s2, 2048, %s43_s7, [#allocation6], %s664_s24, %s664_s24, %s665_s25  }
  0x23   :  { %s668_s13 = smov [#allocation8]  }
  0x24   :  { %s54_s14 = sshll.u32 %s668_s13, 4  ;;  %s55_s14 = int_to_ptr.vmem [resolvable:$true] %s54_s14 }
  0x25   :  { %s623_s15 = scalar_lea.vmem %s55_s14, 2048  ;;  %p628_p2 = scmp.lt.s32.totalorder %s55_s14, %s55_s14 }
  0x26   :  { %p624_p1 = scmp.ne.s32.totalorder %s55_s14, %s623_s15  ;;  %p629_p3 = scmp.lt.s32.totalorder %s623_s15, %s623_s15 }
  0x28   :  { %p630_p4 = por %p629_p3, %p628_p2 }
  0x2a   :  { %p631_p5 = pnand %p630_p4, %p624_p1 }
  0x2c   :  { %634 = shalt.err (!%p631_p5)
}
  0x2d   :  { %60 = dma.hbm_to_vmem [thread:$0]  %s789_s3, 2048, %s55_s14, [#allocation9], %s664_s24, %s664_s24, %s665_s25  }
  0x2e   :  { %655 = dma.done.wait [#allocation3], 128  }
  0x2f   :  { %656 = vsyncadd [#allocation3], 4294967168 }
  0x30   :  { %657 = dma.done.wait [#allocation6], 2304  }
  0x31   :  { %658 = vsyncadd [#allocation6], 4294964992 }
  0x32   :  { %659 = dma.done.wait [#allocation9], 2048  }
  0x33   :  { %660 = vsyncadd [#allocation9], 4294965248  ;;  %v669_v0 = vmov 0.0   ;;  %vm670_vm0 = vmmov 0   ;;  %v80_v1 = vld [vmem:[#allocation5 + $0x8] sm:$0xff]  ;;  %v79_v2 = vld [vmem:[#allocation5] sm:$0xff]  ;;  %v181_v41 = vlaneseq }
  0x34   :  { %465 = vmatprep.subr.mxu0 %v669_v0  ;;  %469 = vmatprep.mubr.msk.f32.mxu0 %vm670_vm0, %v669_v0  ;;  %v77_v3 = vld [vmem:[#allocation2] sm:$0xff]  ;;  %vm81_vm1 = vcmask 130048   ;;  %v207_v4 = vld [vmem:[#allocation7 + $0x78] sm:$0xff]  ;;  %v206_v5 = vld [vmem:[#allocation7 + $0x70] sm:$0xff]  ;;  %s671_s18 = smov [#allocation10]  }
  0x35   :  { %472 = vmatprep.subr.mxu1 %v669_v0  ;;  %504 = vmatprep.mubr.msk.f32.mxu1 %vm670_vm0, %v669_v0  ;;  %v205_v6 = vld [vmem:[#allocation7 + $0x68] sm:$0xff]  ;;  %v204_v7 = vld [vmem:[#allocation7 + $0x60] sm:$0xff]  ;;  %v203_v8 = vld [vmem:[#allocation7 + $0x58] sm:$0xff]  ;;  %v750_v42 = vshrl.u32 %v181_v41, 7  ;;  %s415_s19 = sshll.u32 %s671_s18, 4  ;;  %s416_s19 = int_to_ptr.vmem [resolvable:$true] %s415_s19 }
  0x36   :  { %466 = vmatpush3.msra.mxu0 %v80_v1  ;;  %473 = vmatpush3.msra.mxu1 %v207_v4  ;;  %v202_v9 = vld [vmem:[#allocation7 + $0x50] sm:$0xff]  ;;  %v201_v10 = vld [vmem:[#allocation7 + $0x48] sm:$0xff]  ;;  %v200_v11 = vld [vmem:[#allocation7 + $0x40] sm:$0xff]  ;;  %s635_s20 = scalar_lea.vmem %s416_s19, 128  ;;  %p640_p7 = scmp.lt.s32.totalorder %s416_s19, %s416_s19 }
  0x37   :  { %467 = vmatprep.subr.mxu0 %v669_v0  ;;  %474 = vmatprep.subr.mxu1 %v669_v0  ;;  %v199_v12 = vld [vmem:[#allocation7 + $0x38] sm:$0xff]  ;;  %v198_v13 = vld [vmem:[#allocation7 + $0x30] sm:$0xff]  ;;  %v197_v14 = vld [vmem:[#allocation7 + $0x28] sm:$0xff]  ;;  %v183_v46 = vsub.s32 0, %v750_v42  ;;  %v188_v50 = vsub.s32 1, %v750_v42  ;;  %p636_p6 = scmp.ne.s32.totalorder %s416_s19, %s635_s20  ;;  %p641_p8 = scmp.lt.s32.totalorder %s635_s20, %s635_s20 }
  0x38   :  { %468 = vmatpush3.msra.mxu0 %v79_v2  ;;  %475 = vmatpush3.msra.mxu1 %v206_v5  ;;  %v196_v15 = vld [vmem:[#allocation7 + $0x20] sm:$0xff]  ;;  %v195_v16 = vld [vmem:[#allocation7 + $0x18] sm:$0xff]  ;;  %v194_v17 = vld [vmem:[#allocation7 + $0x10] sm:$0xff] }
  0x39   :  { %470 = vmatmul.mubr.msk.f32.vlgmr.msra.gmra.mxu0 %vm81_vm1, %v77_v3  ;;  %507 = vmatprep.subr.mxu0 %v669_v0  ;;  %v193_v18 = vld [vmem:[#allocation7 + $0x8] sm:$0xff]  ;;  %v192_v19 = vld [vmem:[#allocation7] sm:$0xff]  ;;  %v330_v56 = vld [vmem:[#allocation8 + $0x78] sm:$0xff]  ;;  %p642_p9 = por %p641_p8, %p640_p7 }
  0x3a   :  { %539 = vmatprep.mubr.msk.f32.mxu0 %vm670_vm0, %v669_v0  ;;  %476 = vmatprep.subr.mxu1 %v669_v0  ;;  %v755_v43 = vld [vmem:[%s790_s4] sm:$0xf]  ;;  %v329_v57 = vld [vmem:[#allocation8 + $0x70] sm:$0xff]  ;;  %v327_v59 = vld [vmem:[#allocation8 + $0x60] sm:$0xff] }
  0x3b   :  { %477 = vmatpush3.msra.mxu1 %v205_v6  ;;  %508 = vmatpush3.msra.mxu0 %v330_v56  ;;  %v328_v58 = vld [vmem:[#allocation8 + $0x68] sm:$0xff]  ;;  %v326_v60 = vld [vmem:[#allocation8 + $0x58] sm:$0xff]  ;;  %v325_v61 = vld [vmem:[#allocation8 + $0x50] sm:$0xff]  ;;  %p643_p10 = pnand %p642_p9, %p636_p6 }
  0x3c   :  { %478 = vmatprep.subr.mxu1 %v669_v0  ;;  %509 = vmatprep.subr.mxu0 %v669_v0  ;;  %v324_v62 = vld [vmem:[#allocation8 + $0x48] sm:$0xff]  ;;  %v323_v63 = vld [vmem:[#allocation8 + $0x40] sm:$0xff]  ;;  %v322_v1 = vld [vmem:[#allocation8 + $0x38] sm:$0xff] }
  0x3d   :  { %479 = vmatpush3.msra.mxu1 %v204_v7  ;;  %510 = vmatpush3.msra.mxu0 %v329_v57  ;;  %v321_v2 = vld [vmem:[#allocation8 + $0x30] sm:$0xff]  ;;  %v320_v3 = vld [vmem:[#allocation8 + $0x28] sm:$0xff]  ;;  %v319_v4 = vld [vmem:[#allocation8 + $0x20] sm:$0xff] }
  0x3e   :  { %480 = vmatprep.subr.mxu1 %v669_v0  ;;  %511 = vmatprep.subr.mxu0 %v669_v0  ;;  %v318_v5 = vld [vmem:[#allocation8 + $0x18] sm:$0xff]  ;;  %v317_v6 = vld [vmem:[#allocation8 + $0x10] sm:$0xff]  ;;  %v316_v7 = vld [vmem:[#allocation8 + $0x8] sm:$0xff] }
  0x3f   :  { %481 = vmatpush3.msra.mxu1 %v203_v8  ;;  %512 = vmatpush3.msra.mxu0 %v328_v58  ;;  %v315_v8 = vld [vmem:[#allocation8] sm:$0xff]  ;;  %v427_v41 = vld [vmem:[%s791_s5] ss:$0 sm:$0xff] }
  0x40   :  { %482 = vmatprep.subr.mxu1 %v669_v0  ;;  %513 = vmatprep.subr.mxu0 %v669_v0 }
  0x41   :  { %483 = vmatpush3.msra.mxu1 %v202_v9  ;;  %514 = vmatpush3.msra.mxu0 %v327_v59 }
  0x42   :  { %484 = vmatprep.subr.mxu1 %v669_v0  ;;  %515 = vmatprep.subr.mxu0 %v669_v0 }
  0x43   :  { %485 = vmatpush3.msra.mxu1 %v201_v10  ;;  %516 = vmatpush3.msra.mxu0 %v326_v60 }
  0x44   :  { %486 = vmatprep.subr.mxu1 %v669_v0  ;;  %517 = vmatprep.subr.mxu0 %v669_v0 }
  0x45   :  { %487 = vmatpush3.msra.mxu1 %v200_v11  ;;  %518 = vmatpush3.msra.mxu0 %v325_v61 }
  0x46   :  { %488 = vmatprep.subr.mxu1 %v669_v0  ;;  %519 = vmatprep.subr.mxu0 %v669_v0 }
  0x47   :  { %489 = vmatpush3.msra.mxu1 %v199_v12  ;;  %520 = vmatpush3.msra.mxu0 %v324_v62 }
  0x48   :  { %490 = vmatprep.subr.mxu1 %v669_v0  ;;  %521 = vmatprep.subr.mxu0 %v669_v0 }
  0x49   :  { %491 = vmatpush3.msra.mxu1 %v198_v13  ;;  %522 = vmatpush3.msra.mxu0 %v323_v63 }
  0x4a   :  { %492 = vmatprep.subr.mxu1 %v669_v0  ;;  %523 = vmatprep.subr.mxu0 %v669_v0 }
  0x4b   :  { %493 = vmatpush3.msra.mxu1 %v197_v14  ;;  %524 = vmatpush3.msra.mxu0 %v322_v1 }
  0x4c   :  { %494 = vmatprep.subr.mxu1 %v669_v0  ;;  %525 = vmatprep.subr.mxu0 %v669_v0 }
  0x4d   :  { %495 = vmatpush3.msra.mxu1 %v196_v15  ;;  %526 = vmatpush3.msra.mxu0 %v321_v2 }
  0x4e   :  { %496 = vmatprep.subr.mxu1 %v669_v0  ;;  %527 = vmatprep.subr.mxu0 %v669_v0 }
  0x4f   :  { %497 = vmatpush3.msra.mxu1 %v195_v16  ;;  %528 = vmatpush3.msra.mxu0 %v320_v3 }
  0x50   :  { %498 = vmatprep.subr.mxu1 %v669_v0  ;;  %529 = vmatprep.subr.mxu0 %v669_v0 }
  0x51   :  { %499 = vmatpush3.msra.mxu1 %v194_v17  ;;  %530 = vmatpush3.msra.mxu0 %v319_v4 }
  0x52   :  { %500 = vmatprep.subr.mxu1 %v669_v0  ;;  %531 = vmatprep.subr.mxu0 %v669_v0 }
  0x53   :  { %501 = vmatpush3.msra.mxu1 %v193_v18  ;;  %532 = vmatpush3.msra.mxu0 %v318_v5 }
  0x54   :  { %502 = vmatprep.subr.mxu1 %v669_v0  ;;  %533 = vmatprep.subr.mxu0 %v669_v0 }
  0x55   :  { %503 = vmatpush3.msra.mxu1 %v192_v19  ;;  %534 = vmatpush3.msra.mxu0 %v317_v6 }
  0x56   :  { %535 = vmatprep.subr.mxu0 %v669_v0 }
  0x57   :  { %536 = vmatpush3.msra.mxu0 %v316_v7 }
  0x58   :  { %537 = vmatprep.subr.mxu0 %v669_v0 }
  0x59   :  { %538 = vmatpush3.msra.mxu0 %v315_v8 }
  0xf9   :  { %v151_v20 = vpop.f32.mrf.mxu0 }
  0xfa   :  { %v155_v21 = vrot.slane %v151_v20, 4  ;;  %v161_v22 = vmul.f32 %v151_v20, %v151_v20 }
  0xfb   :  { %v471_v23 = vpop.f32.mrf.mxu0 }
  0xfc   :  { %v156_v24 = vadd.f32 %v155_v21, %v151_v20  ;;  %v162_v25 = vrot.slane %v161_v22, 4 }
  0xfe   :  { %v157_v26 = vrot.slane %v156_v24, 2  ;;  %v163_v27 = vadd.f32 %v162_v25, %v161_v22 }
 0x100   :  { %v158_v28 = vadd.f32 %v157_v26, %v156_v24  ;;  %v164_v29 = vrot.slane %v163_v27, 2 }
 0x102   :  { %v159_v30 = vrot.slane %v158_v28, 1  ;;  %v165_v31 = vadd.f32 %v164_v29, %v163_v27 }
 0x104   :  { %v160_v32 = vadd.f32 %v159_v30, %v158_v28  ;;  %v166_v33 = vrot.slane %v165_v31, 1 }
 0x106   :  { %v167_v34 = vadd.f32 %v166_v33, %v165_v31  ;;  %v168_v35 = vmul.f32 0.125, %v160_v32  ;;  %v306_v31 = vsub.s32 2, %v750_v42 }
 0x108   :  { %v169_v36 = vmul.f32 0.125, %v167_v34  ;;  %v170_v37 = vmul.f32 %v168_v35, %v168_v35 }
 0x10a   :  { %v171_v38 = vsub.f32 %v169_v36, %v170_v37 }
 0x10c   :  { %v172_v39 = vmax.f32 %v171_v38, 0.0 }
 0x10e   :  { %v173_v40 = vadd.f32 1e-05, %v172_v39 }
 0x110   :  { %551 = vrsqrt.f32 %v173_v40 }
 0x11d   :  { %v552_v44 = vpop.eup %551 }
 0x11e   :  { %v175_v45 = vmul.f32 %v552_v44, %v755_v43 }
 0x120   :  { %v176_v47 = vmul.f32 %v175_v45, %v168_v35  ;;  %v184_v48 = vrot.slane %v175_v45, %v183_v46  ;;  %v311_v35 = vsub.s32 3, %v750_v42 }
 0x122   :  { %v178_v49 = vrot.slane %v176_v47, 7  ;;  %v185_v52 = vmul.f32 %v184_v48, %v151_v20 }
 0x124   :  { %v180_v51 = vsub.f32 %v755_v43, %v178_v49 }
 0x126   :  { %v189_v53 = vrot.slane %v180_v51, %v188_v50 }
 0x128   :  { %v190_v54 = vadd.f32 %v189_v53, %v185_v52 }
 0x12a   :  { %v191_v55 = vmax.f32 %v190_v54, 0.0 }
 0x12c   :  { %505 = vmatmul.mubr.f32.vlgmr.msra.gmra.mxu1 %v191_v55 }
 0x1ec   :  { %v274_v9 = vpop.f32.mrf.mxu1 }
 0x1ed   :  { %v278_v10 = vrot.slane %v274_v9, 4  ;;  %v284_v11 = vmul.f32 %v274_v9, %v274_v9 }
 0x1ee   :  { %v506_v12 = vpop.f32.mrf.mxu1 }
 0x1ef   :  { %v279_v13 = vadd.f32 %v278_v10, %v274_v9  ;;  %v285_v14 = vrot.slane %v284_v11, 4 }
 0x1f1   :  { %v280_v15 = vrot.slane %v279_v13, 2  ;;  %v286_v16 = vadd.f32 %v285_v14, %v284_v11 }
 0x1f3   :  { %v281_v17 = vadd.f32 %v280_v15, %v279_v13  ;;  %v287_v18 = vrot.slane %v286_v16, 2 }
 0x1f5   :  { %v282_v19 = vrot.slane %v281_v17, 1  ;;  %v288_v20 = vadd.f32 %v287_v18, %v286_v16 }
 0x1f7   :  { %v283_v21 = vadd.f32 %v282_v19, %v281_v17  ;;  %v289_v22 = vrot.slane %v288_v20, 1 }
 0x1f9   :  { %v290_v23 = vadd.f32 %v289_v22, %v288_v20  ;;  %v291_v24 = vmul.f32 0.125, %v283_v21 }
 0x1fb   :  { %v292_v25 = vmul.f32 0.125, %v290_v23  ;;  %v293_v26 = vmul.f32 %v291_v24, %v291_v24 }
 0x1fd   :  { %v294_v0 = vsub.f32 %v292_v25, %v293_v26 }
 0x1ff   :  { %v295_v27 = vmax.f32 %v294_v0, 0.0 }
 0x201   :  { %v296_v28 = vadd.f32 1e-05, %v295_v27 }
 0x203   :  { %553 = vrsqrt.f32 %v296_v28 }
 0x210   :  { %v554_v29 = vpop.eup %553 }
 0x211   :  { %v298_v30 = vmul.f32 %v554_v29, %v755_v43 }
 0x213   :  { %v299_v32 = vmul.f32 %v298_v30, %v291_v24  ;;  %v307_v34 = vrot.slane %v298_v30, %v306_v31 }
 0x215   :  { %v301_v33 = vrot.slane %v299_v32, 7  ;;  %v308_v37 = vmul.f32 %v307_v34, %v274_v9 }
 0x217   :  { %v303_v36 = vsub.f32 %v755_v43, %v301_v33 }
 0x219   :  { %v312_v38 = vrot.slane %v303_v36, %v311_v35 }
 0x21b   :  { %v313_v39 = vadd.f32 %v312_v38, %v308_v37 }
 0x21d   :  { %v314_v40 = vmax.f32 %v313_v39, 0.0 }
 0x21f   :  { %540 = vmatmul.mubr.f32.vlgmr.msra.gmra.mxu0 %v314_v40 }
 0x2df   :  { %v404_v44 = vpop.f32.mrf.mxu0 }
 0x2e0   :  { %v405_v45 = vadd.f32 %v427_v41, %v404_v44 }
 0x2e1   :  { %v541_v46 = vpop.f32.mrf.mxu0 }
 0x2e2   :  { %408 = vst [vmem:[#allocation10] sm:$0xff] %v405_v45 }
 0x2e3   :  { %646 = shalt.err (!%p643_p10)
}
 0x2e4   :  { %418 = dma.vmem_to_hbm [thread:$0]  %s416_s19, 128, %s792_s6, [#allocation4]  }
 0x2e5   :  { %661 = dma.done.wait [#allocation4], 128  }
 0x2e6   :  { %662 = vsyncadd [#allocation4], 4294967168 }
 0x2e7   :  { %422 = vsyncpa [#allocation3], 1 }
 0x2e8   :  { %423 = vsyncpa [#allocation6], 1 }
 0x2e9   :  { %424 = vsyncpa [#allocation9], 1 }
 0x2ea   :  { %425 = vsyncpa [#allocation4], 1 }

</bundles_post_ra>
